<compile_context>
chip_gen: v7x
topology: tpu7x:2x2x1
jax: 0.10.0
libtpu: 0.0.40
codegen_flags: <defaults>
</compile_context>

<pallas_src>
import functools

import jax
import jax.numpy as jnp
from jax import lax
from jax.experimental import pallas as pl
from jax.experimental.pallas import tpu as pltpu


def _inv_pow(t, s, beta):
    """Compute t**(-beta) with t = 1 + s (s >= 0) using at most 2 EUP ops."""
    if beta == 0.75:
        r = lax.rsqrt(t)              # t^-0.5   (EUP)
        return r * jnp.sqrt(r)        # t^-0.75  (EUP + VPU mul)
    # general path: exp(-beta * log(t))  (2 EUP ops)
    return jnp.exp(-beta * jnp.log(t))


def _lrn_ls1_kernel(x_ref, o_ref, *, alpha, beta):
    # block: (1, C, T) -> operate on (C, T)
    xf = x_ref[0].astype(jnp.float32)
    s = alpha * (xf * xf)                  # alpha * avg  (local_size == 1)
    inv = _inv_pow(1.0 + s, s, beta)
    o_ref[0] = (xf * inv).astype(o_ref.dtype)


def _lrn_band_kernel(band_ref, x_ref, o_ref, *, beta):
    # band_ref: (C, C) f32 with entries alpha/local_size inside the channel window.
    # x block:  (1, C, T)
    xf = x_ref[0].astype(jnp.float32)      # (C, T)
    x2 = xf * xf
    # windowed channel sum * alpha / local_size, done on the MXU
    s = jnp.dot(band_ref[...], x2, preferred_element_type=jnp.float32)  # (C, T)
    inv = _inv_pow(1.0 + s, s, beta)
    o_ref[0] = (xf * inv).astype(o_ref.dtype)


def _pick_spatial_tile(hw_pad, c, itemsize):
    """Largest multiple-of-128 divisor of hw_pad, capped by a VMEM budget and 1024."""
    # rough per-element working set: double-buffered in + out blocks + ~3 f32 temps
    bytes_per_elem = 4 * itemsize + 3 * 4
    budget = 16 * 1024 * 1024
    t_cap = budget // max(1, c * bytes_per_elem)
    t_cap = max(128, min(1024, (t_cap // 128) * 128))
    best = 128
    t = 128
    limit = min(hw_pad, t_cap)
    while t <= limit:
        if hw_pad % t == 0:
            best = t
        t += 128
    return min(best, hw_pad)


def lrn(x, local_size=1, alpha=1.0, beta=0.75):
    """Across-channel LRN matching the PyTorch module. x: (N, C, H, W)."""
    N, C, H, W = x.shape
    HW = H * W
    xf = x.reshape(N, C, HW)

    # pad spatial axis to a multiple of 128 (zero padding is harmless: out(pad)=0)
    HW_pad = ((HW + 127) // 128) * 128
    if HW_pad != HW:
        xf = jnp.pad(xf, ((0, 0), (0, 0), (0, HW_pad - HW)))

    T = _pick_spatial_tile(HW_pad, C, jnp.dtype(x.dtype).itemsize)
    grid = (N, HW_pad // T)

    cparams = pltpu.CompilerParams(
        dimension_semantics=("parallel", "parallel"),
        vmem_limit_bytes=32 * 1024 * 1024,
    )
    x_spec = pl.BlockSpec((1, C, T), lambda n, t: (n, 0, t))
    out_shape = jax.ShapeDtypeStruct((N, C, HW_pad), x.dtype)

    if local_size == 1:
        kernel = functools.partial(
            _lrn_ls1_kernel, alpha=float(alpha), beta=float(beta)
        )
        out = pl.pallas_call(
            kernel,
            out_shape=out_shape,
            grid_spec=pltpu.PrefetchScalarGridSpec(
                num_scalar_prefetch=0,
                grid=grid,
                in_specs=[x_spec],
                out_specs=x_spec,
            ),
            compiler_params=cparams,
        )(xf)
    else:
        # banded 0/1 window matrix scaled by alpha/local_size (folds AvgPool + alpha)
        p = (local_size - 1) // 2
        i = jnp.arange(C)[:, None]
        j = jnp.arange(C)[None, :]
        band = ((j >= i - p) & (j <= i - p + local_size - 1)).astype(jnp.float32)
        band = band * (float(alpha) / float(local_size))

        kernel = functools.partial(_lrn_band_kernel, beta=float(beta))
        out = pl.pallas_call(
            kernel,
            out_shape=out_shape,
            grid_spec=pltpu.PrefetchScalarGridSpec(
                num_scalar_prefetch=0,
                grid=grid,
                in_specs=[
                    pl.BlockSpec((C, C), lambda n, t: (0, 0)),  # band, resident
                    x_spec,
                ],
                out_specs=x_spec,
            ),
            compiler_params=cparams,
        )(band, xf)

    if HW_pad != HW:
        out = out[:, :, :HW]
    return out.reshape(N, C, H, W)


def _lrn_ref(x, local_size=1, alpha=1.0, beta=0.75):
    """Pure-JAX reference matching the PyTorch module (odd local_size / 1)."""
    N, C, H, W = x.shape
    x2 = (x.astype(jnp.float32)) ** 2
    pad = (local_size - 1) // 2
    x2p = jnp.pad(x2, ((0, 0), (pad, local_size - 1 - pad), (0, 0), (0, 0)))
    acc = jnp.zeros_like(x2)
    for d in range(local_size):
        acc = acc + x2p[:, d:d + C]
    avg = acc / local_size
    div = (avg * alpha + 1.0) ** beta
    return (x.astype(jnp.float32) / div).astype(x.dtype)


if __name__ == "__main__":
    key = jax.random.PRNGKey(0)
    # Small shapes consistent with an NCHW conv feature map.
    x = jax.random.normal(key, (2, 4, 16, 16), dtype=jnp.float32)

    # Module defaults: local_size=1, alpha=1.0, beta=0.75, ACROSS_CHANNELS=True
    out = jax.block_until_ready(lrn(x, local_size=1, alpha=1.0, beta=0.75))
    ref = _lrn_ref(x, local_size=1, alpha=1.0, beta=0.75)
    assert out.shape == x.shape and out.dtype == x.dtype
    assert jnp.allclose(out, ref, atol=1e-5, rtol=1e-5), "mismatch (local_size=1)"

    # Non-trivial channel window exercises the banded-matmul path.
    out5 = jax.block_until_ready(lrn(x, local_size=5, alpha=1e-2, beta=0.75))
    ref5 = _lrn_ref(x, local_size=5, alpha=1e-2, beta=0.75)
    assert jnp.allclose(out5, ref5, atol=1e-5, rtol=1e-5), "mismatch (local_size=5)"

    # Non-128-aligned spatial extent exercises the wrapper padding path.
    x2 = jax.random.normal(jax.random.PRNGKey(1), (2, 4, 10, 10), dtype=jnp.float32)
    outp = jax.block_until_ready(lrn(x2, local_size=3, alpha=0.1, beta=0.75))
    refp = _lrn_ref(x2, local_size=3, alpha=0.1, beta=0.75)
    assert jnp.allclose(outp, refp, atol=1e-5, rtol=1e-5), "mismatch (padded HW)"

    print("KERNEL_OK")
</pallas_src>

<mosaic_0001>
module attributes {stable_mosaic.version = 11 : i64} {
  func.func @_lrn_ls1_kernel(%arg0: i32, %arg1: i32, %arg2: memref<1x4x256xf32, #tpu.memory_space<vmem>>, %arg3: memref<1x4x256xf32, #tpu.memory_space<vmem>>) attributes {dimension_semantics = [#tpu.dimension_semantics<parallel>, #tpu.dimension_semantics<parallel>], iteration_bounds = array<i64: 2, 1>, scalar_prefetch = 0 : i64, scratch_operands = 0 : i64, tpu.core_type = #tpu.core_type<tc>, window_params = [{transform_indices = @transform_0, window_bounds = array<i64: 1, 4, 256>}, {transform_indices = @transform_1, window_bounds = array<i64: 1, 4, 256>}]} {
    %c0 = arith.constant 0 : index
    %c0_0 = arith.constant 0 : index
    %c0_1 = arith.constant 0 : index
    %0 = vector.load %arg2[%c0, %c0_0, %c0_1] : memref<1x4x256xf32, #tpu.memory_space<vmem>>, vector<1x4x256xf32>
    %1 = vector.shape_cast %0 : vector<1x4x256xf32> to vector<4x256xf32>
    %2 = arith.mulf %1, %1 : vector<4x256xf32>
    %cst = arith.constant 1.000000e+00 : f32
    %3 = vector.broadcast %cst : f32 to vector<4x256xf32>
    %4 = arith.mulf %3, %2 : vector<4x256xf32>
    %cst_2 = arith.constant 1.000000e+00 : f32
    %5 = vector.broadcast %cst_2 : f32 to vector<4x256xf32>
    %6 = arith.addf %5, %4 : vector<4x256xf32>
    %7 = math.rsqrt %6 : vector<4x256xf32>
    %8 = math.sqrt %7 : vector<4x256xf32>
    %9 = arith.mulf %7, %8 : vector<4x256xf32>
    %10 = arith.mulf %1, %9 : vector<4x256xf32>
    %c0_3 = arith.constant 0 : index
    %c0_4 = arith.constant 0 : index
    %c0_5 = arith.constant 0 : index
    %11 = vector.load %arg3[%c0_3, %c0_4, %c0_5] : memref<1x4x256xf32, #tpu.memory_space<vmem>>, vector<1x4x256xf32>
    %12 = vector.shape_cast %11 : vector<1x4x256xf32> to vector<4x256xf32>
    %13 = vector.shape_cast %10 : vector<4x256xf32> to vector<1x4x256xf32>
    tpu.vector_store %arg3[%c0_3, %c0_4, %c0_5], %13 {strides = array<i32>} : memref<1x4x256xf32, #tpu.memory_space<vmem>>, vector<1x4x256xf32>,
    return
  }
  func.func @transform_0(%arg0: i32, %arg1: i32) -> (i32, i32, i32) {
    %c0_i32 = arith.constant 0 : i32
    %c0_i32_0 = arith.constant 0 : i32
    return %arg0, %c0_i32, %arg1 : i32, i32, i32
  }
  func.func @transform_1(%arg0: i32, %arg1: i32) -> (i32, i32, i32) {
    %c0_i32 = arith.constant 0 : i32
    %c0_i32_0 = arith.constant 0 : i32
    return %arg0, %c0_i32, %arg1 : i32, i32, i32
  }
}

</mosaic_0001>

<bundles_post_ra>
// kernel: tpu_custom_call.1
= control target key start
LH: loop header
LB: loop body
LE: loop exit
PB: predicated region body
PF: predicated region fallthrough
CT: control target
= control target key end

     0   :  { %6 = vsyncpa [#allocation3], 0  ;;  %s649_s0 = inlined_call_operand.hbm [shape: f32[2,4,256], index: 0, kind: input, shape index: {}]   ;;  %s650_s1 = inlined_call_operand.hbm [shape: f32[2,4,256], index: 1, kind: output, shape index: {}]  }
   0x1   :  { %8 = vsyncpa [#allocation3 + $0x1], 0 }
   0x2   :  { %9 = vsyncpa [#allocation4], 0 }
   0x3   :  { %11 = vsyncpa [#allocation4 + $0x1], 0  ;;  %s477_s6 = smov 0   ;;  %s479_s7 = smov 0  }
   0x4   :  { %s481_s8 = smov 0   ;;  %s483_s9 = smov 0  }
   0x5   :  { %s485_s10 = smov 0   ;;  %s487_s11 = smov 0  }
   0x6 LB: > { %s268_s12 = sadd.s32 4294967295, %s463_s11   ;;  %s269_s13 = sadd.s32 4294967294, %s463_s11   ;;  %s463_s11 = sphi %s487_s11, %s17_s11   ;;  %s459_s10 = sphi %s485_s10, %s666_s10   ;;  %s455_s9 = sphi %s483_s9, %s665_s9   ;;  %s451_s8 = sphi %s481_s8, %s664_s8   ;;  %s447_s7 = sphi %s479_s7, %s663_s7   ;;  %s443_s6 = sphi %s477_s6, %s662_s6  }
   0x7   : > { %s29_s14 = sadd.s32 1, %s459_s10  ;;  %s38_s15 = sadd.s32 1, %s451_s8 }
   0x8   : > { %p31_p0 = scmp.ge.s32.totalorder %s29_s14, 2  ;;  %p45_p1 = scmp.ne.s32.totalorder %s451_s8, %s447_s7 }
   0x9   : > { %p46_p2 = scmp.eq.s32.totalorder %s463_s11, 0  ;;  %p51_p3 = scmp.ne.s32.totalorder %s447_s7, %s443_s6 }
   0xa   : > { %s668_s14 = smov (%p31_p0, %s29_s14), 0  ;;  %p52_p5 = scmp.eq.s32.totalorder %s268_s12, 0 }
   0xb   : > { %p518_p4 = por %p46_p2, %p45_p1  ;;  %s33_s17 = ssub.s32 %s459_s10, %s668_s14 }
   0xc   : > { %p77_p6 = scmp.eq.s32.totalorder %s268_s12, 1  ;;  %p36_p7 = scmp.eq.s32.totalorder %s33_s17, 0 }
   0xd   : > { %p524_p8 = por %p52_p5, %p51_p3  ;;  %p83_p10 = scmp.eq.s32.totalorder %s269_s13, 1 }
   0xe   : > { %p528_p9 = por %p77_p6, %p45_p1  ;;  %p297_p13 = scmp.lt.s32.totalorder %s463_s11, 2 }
   0xf   : > { %s533_s20 = scalar_select %p36_p7, %s451_s8, %s38_s15  }
  0x10   : > { %s654_s19 = scalar_select %p528_p9, 1, 0 }
  0x11   : > { %p535_p11 = por %p83_p10, %p51_p3  ;;  %s103_s22 = sand.u32 1, %s451_s8  }
  0x12   : > { %s272_s23 = sshll.u32 %s103_s22, 3  ;;  %s283_s24 = sshll.u32 %s459_s10, 7 }
  0x13   : > { %s655_s21 = scalar_select %p535_p11, 1, 0 }
  0x14   : > { %s546_s27 = scalar_lea.hbm %s649_s0, %s283_s24  ;;  %s107_s28 = scalar_lea.vmem [#allocation2], %s272_s23 }
  0x15   : > { %s117_s29 = sshll.u32 %s107_s28, 4  ;;  %p552_p0 = pnand %p297_p13, %p518_p4  ;;  %s548_s29 = int_to_ptr.vmem [resolvable:$true] %s117_s29 }
  0x16   : > { %s104_s2 = scalar_lea.sflag [#allocation3], %s103_s22  ;;  %s351_s3 = scalar_lea.hbm %s546_s27, 128 }
  0x17   : > { %p352_p3 = scmp.ne.s32.totalorder %s546_s27, %s351_s3  ;;  %p353_p5 = pneg %p552_p0 }
  0x18   : > { %s356_s12 = scalar_lea.hbm %s649_s0, 256  ;;  %p357_p4 = scmp.lt.u32.totalorder %s546_s27, %s649_s0 }
  0x19   : > { %p354_p6 = pnand %p353_p5, %p352_p3  ;;  %p358_p10 = scmp.lt.u32.totalorder %s356_s12, %s351_s3 }
  0x1a   : > { %p360_p12 = scmp.lt.u32.totalorder %s351_s3, %s546_s27 }
  0x1b   : > { %p355_p7 = pneg %p354_p6  ;;  %p359_p13 = por %p358_p10, %p357_p4 }
  0x1d   : > { %p361_p1 = por %p360_p12, %p359_p13 }
  0x1f   : > { %p362_p2 = pnand %p361_p1, %p355_p7 }
  0x21   : > { %365 = shalt.err (!%p362_p2)
}
  0x22   : > { %s366_s16 = scalar_lea.vmem %s548_s29, 128  ;;  %s465_s17 = smov [#allocation2]  }
  0x23   : > { %p367_p3 = scmp.ne.s32.totalorder %s548_s29, %s366_s16  ;;  %s371_s22 = sshll.u32 %s465_s17, 4  ;;  %s372_s22 = int_to_ptr.vmem [resolvable:$false] %s371_s22 }
  0x24   : > { %s373_s23 = scalar_lea.vmem %s372_s22, 256  ;;  %p374_p9 = scmp.lt.s32.totalorder %s548_s29, %s372_s22 }
  0x25   : > { %p369_p6 = pnand %p367_p3, %p353_p5  ;;  %p375_p4 = scmp.lt.s32.totalorder %s373_s23, %s366_s16 }
  0x27   : > { %p370_p11 = pneg %p369_p6  ;;  %p376_p10 = por %p375_p4, %p374_p9 }
  0x29   : > { %p377_p12 = pnand %p376_p10, %p370_p11 }
  0x2b   : > { %380 = shalt.err (!%p377_p12)
}
  0x2c   : > { %292 = dma.hbm_to_vmem [thread:$0]  (!%p552_p0), %s546_s27, 128, %s548_s29, %s104_s2  }
  0x2d   : > { %p657_p1 = scmp.lt.s32.totalorder %s463_s11, 3  ;;  %p658_p2 = scmp.ge.s32.totalorder %s463_s11, 1 }
  0x2f   : > { %p123_p5 = pnand %p658_p2, %p657_p1 }
  0x30   : > { %s588_s24 = sand.u32 (!%p123_p5), 1, %s447_s7  }
  0x31   : > { %126 = sbr.rel (%p123_p5) target bundleno = 106 (0x6a), region = 24  ;;  %s276_s25 = sshll.u32 (!%p123_p5), %s588_s24, 3 }
  0x32   : > { %s129_s26 = scalar_lea.sflag (!%p123_p5), [#allocation3], %s588_s24  ;;  %s132_s28 = scalar_lea.vmem (!%p123_p5), [#allocation2], %s276_s25 }
  0x38   : > { %434 = dma.done.wait (%p524_p8), %s129_s26, 128  }
  0x39   : > { %436 = vsyncadd (%p524_p8), %s129_s26, 4294967168  ;;  %v153_v0 = vld [vmem:[%s132_s28] sm:$0xff]  ;;  %s150_s27 = scalar_lea.vmem [#allocation5], %s276_s25  ;;  %s284_s18 = sshll.u32 %s455_s9, 7 }
  0x3a   : > { %v154_v1 = vmul.f32 %v153_v0, %v153_v0  ;;  %s184_s29 = sshll.u32 %s150_s27, 4  ;;  %s602_s3 = scalar_lea.hbm %s650_s1, %s284_s18  ;;  %s597_s29 = int_to_ptr.vmem [resolvable:$true] %s184_s29 }
  0x3b   : > { %s168_s4 = scalar_lea.sflag [#allocation4], %s588_s24  ;;  %s381_s5 = scalar_lea.vmem %s597_s29, 128 }
  0x3c   : > { %v155_v2 = vadd.f32 1.0, %v154_v1  ;;  %p382_p8 = scmp.ne.s32.totalorder %s597_s29, %s381_s5  ;;  %p659_p9 = scmp.ne.s32.totalorder %s654_s19, 0 }
  0x3d   : > { %s466_s9 = smov [#allocation5]  }
  0x3e   : > { %347 = vrsqrt.f32 %v155_v2  ;;  %p383_p11 = pnand %p382_p8, %p659_p9  ;;  %s385_s12 = sshll.u32 %s466_s9, 4  ;;  %s386_s12 = int_to_ptr.vmem [resolvable:$false] %s385_s12 }
  0x3f   : > { %s387_s13 = scalar_lea.vmem %s386_s12, 256  ;;  %p388_p7 = scmp.lt.s32.totalorder %s597_s29, %s386_s12 }
  0x40   : > { %p384_p0 = pneg %p383_p11  ;;  %p389_p13 = scmp.lt.s32.totalorder %s387_s13, %s381_s5 }
  0x42   : > { %p390_p3 = por %p389_p13, %p388_p7 }
  0x44   : > { %p391_p6 = pnand %p390_p3, %p384_p0 }
  0x48   : > { %v348_v3 = vpop.eup %347 }
  0x49   : > { %349 = vrsqrt.f32 %v348_v3  ;;  %vm159_vm0 = vcmp.eq.f32.partialorder %v348_v3, inf  ;;  %v162_v5 = vand.u32 2147483648, %v348_v3  ;;  %vm161_vm1 = vcmp.eq.f32.partialorder %v348_v3, 0.0 }
  0x53   : > { %v350_v4 = vpop.eup %349 }
  0x54   : > { %v158_v6 = vmul.f32 %v350_v4, %v348_v3 }
  0x56   : > { %v160_v7 = vsel %vm159_vm0, %v348_v3, %v158_v6 }
  0x57   : > { %v163_v8 = vsel %vm161_vm1, %v162_v5, %v160_v7 }
  0x58   : > { %v164_v9 = vmul.f32 %v348_v3, %v163_v8 }
  0x5a   : > { %v165_v10 = vmul.f32 %v164_v9, %v153_v0 }
  0x5c   : > { %166 = vst [vmem:[%s150_s27] sm:$0xff] %v165_v10 }
  0x5d   : > { %394 = shalt.err (!%p391_p6)
}
  0x5e   : > { %s395_s15 = scalar_lea.hbm %s602_s3, 128  ;;  %s399_s22 = scalar_lea.hbm %s650_s1, 256 }
  0x5f   : > { %p396_p4 = scmp.ne.s32.totalorder %s602_s3, %s395_s15  ;;  %p400_p1 = scmp.lt.u32.totalorder %s602_s3, %s650_s1 }
  0x60   : > { %p401_p2 = scmp.lt.u32.totalorder %s399_s22, %s395_s15  ;;  %p403_p8 = scmp.lt.u32.totalorder %s395_s15, %s602_s3 }
  0x61   : > { %p397_p10 = pnand %p396_p4, %p659_p9 }
  0x62   : > { %p402_p5 = por %p401_p2, %p400_p1 }
  0x63   : > { %p398_p12 = pneg %p397_p10 }
  0x64   : > { %p404_p11 = por %p403_p8, %p402_p5 }
  0x66   : > { %p405_p0 = pnand %p404_p11, %p398_p12 }
  0x68   : > { %408 = shalt.err (!%p405_p0)
}
  0x69   : > { %287 = dma.vmem_to_hbm [thread:$0]  (%p659_p9), %s597_s29, 128, %s602_s3, %s168_s4  }
  0x6a PF: > { %s196_s25 = sand.u32 1, %s443_s6   ;;  %p660_p7 = scmp.ne.s32.totalorder %s655_s21, 0 }
  0x6b   : > { %p661_p13 = scmp.ge.s32.totalorder %s463_s11, 2  ;;  %s197_s26 = scalar_lea.sflag [#allocation4], %s196_s25 }
  0x6d   : > { %p294_p3 = pnand %p661_p13, %p660_p7 }
  0x6f   : > { %438 = dma.done.wait (!%p294_p3), %s197_s26, 128  }
  0x70   : > { %440 = vsyncadd (!%p294_p3), %s197_s26, 4294967168  ;;  %s17_s11 = sadd.s32 1, %s463_s11   ;;  %s662_s6 = smov %s447_s7 }
  0x71   : > { %p14_p6 = scmp.ge.s32.totalorder %s17_s11, 4   ;;  %s663_s7 = smov %s451_s8 }
  0x72   : > { %s664_s8 = smov %s533_s20  ;;  %s665_s9 = smov %s459_s10 }
  0x73   : > { %s666_s10 = smov %s668_s14  ;;  %16 = sbr.rel (!%p14_p6) target bundleno = 6 (0x6), region = 69 }
  0x7a   :  { %202 = vsyncpa [#allocation3], 1 }
  0x7b   :  { %204 = vsyncpa [#allocation3 + $0x1], 1 }
  0x7c   :  { %205 = vsyncpa [#allocation4], 1 }
  0x7d   :  { %207 = vsyncpa [#allocation4 + $0x1], 1 }

</bundles_post_ra>
